<compile_context>
chip_gen: v7x
topology: tpu7x:2x2x1
jax: 0.10.0
libtpu: 0.0.40
codegen_flags: <defaults>
</compile_context>

<pallas_src>
import jax
import jax.numpy as jnp
from jax.experimental import pallas as pl
from jax.experimental.pallas import tpu as pltpu


def _round_up(x, m):
    return ((x + m - 1) // m) * m


def _cdiv(a, b):
    return (a + b - 1) // b


def _sublane_multiple(dtype):
    # Min second-to-last block dim per dtype: 8 (f32), 16 (bf16/f16), 32 (int8/fp8).
    return max(8, 32 // jnp.dtype(dtype).itemsize)


def _default_tiles(dtype):
    # Chosen so 2-deep pipelined x/W/out blocks (+ f32 acc) stay well inside the
    # scoped-VMEM budget on every generation while reaching the compute ridge.
    if jnp.dtype(dtype).itemsize >= 4:      # float32
        return 512, 512, 512
    return 1024, 1024, 512                  # bf16 / fp16 / int8 / fp8


def _linear_kernel_f32_out(x_ref, w_ref, b_ref, o_ref):
    """One (tm, tn) float32 output tile, accumulated in-place over the K axis."""
    k = pl.program_id(2)

    @pl.when(k == 0)
    def _init():
        o_ref[...] = jnp.broadcast_to(b_ref[...].astype(jnp.float32), o_ref.shape)

    o_ref[...] += jnp.dot(x_ref[...], w_ref[...], preferred_element_type=jnp.float32)


def _linear_kernel_lowp_out(x_ref, w_ref, b_ref, o_ref, acc_ref):
    """Low-precision output: f32 VMEM scratch accumulator, cast on K-finalize."""
    k = pl.program_id(2)

    @pl.when(k == 0)
    def _init():
        acc_ref[...] = jnp.broadcast_to(b_ref[...].astype(jnp.float32), acc_ref.shape)

    acc_ref[...] += jnp.dot(x_ref[...], w_ref[...], preferred_element_type=jnp.float32)

    @pl.when(k == pl.num_programs(2) - 1)
    def _finalize():
        o_ref[...] = acc_ref[...].astype(o_ref.dtype)


def make_projection(weight, bias, *, tm=None, tn=None, tk=None):
    """Build `apply(x) = x @ weight.T + bias` (PyTorch nn.Linear forward).

    weight: (output_dim, input_dim) in PyTorch layout; bias: (output_dim,).
    The weight is transposed and zero-padded once here (one-time prep); every
    forward call then streams it in the MXU-friendly (K, N) layout.
    """
    N, K = weight.shape
    tm_def, tn_def, tk_def = _default_tiles(weight.dtype)
    tm_def = tm if tm is not None else tm_def
    tn_def = tn if tn is not None else tn_def
    tk_def = tk if tk is not None else tk_def

    # K tile: take the whole K if it fits (full-dim blocks are always legal and
    # need no padding); otherwise a 128-aligned tile, K zero-padded to a multiple.
    if K <= tk_def:
        tk_eff, K_p = K, K
    else:
        tk_eff = _round_up(min(tk_def, K), 128)
        K_p = _round_up(K, tk_eff)

    # N padding (one-time) only when N >= 128, to keep weight rows lane-dense.
    N_p = N if N < 128 else _round_up(N, 128)

    w_kn = weight.T                                     # (K, N) — transposed once.
    if (K_p, N_p) != (K, N):
        w_kn = jnp.pad(w_kn, ((0, K_p - K), (0, N_p - N)))
    b_row = bias.reshape(1, N)
    if N_p != N:
        b_row = jnp.pad(b_row, ((0, 0), (0, N_p - N)))

    def apply(x):
        if x.shape[-1] != K:
            raise ValueError(f"expected last dim {K}, got {x.shape[-1]}")
        lead_shape = x.shape[:-1]
        x2d = x.reshape(-1, K)
        M = x2d.shape[0]

        # Only K needs zero padding; ragged M/N blocks are handled by Pallas
        # (garbage overhang rows/cols land only in dropped output rows/cols).
        if K_p != K:
            x2d = jnp.pad(x2d, ((0, 0), (0, K_p - K)))

        out_dtype = x.dtype
        sub = _sublane_multiple(out_dtype)
        tm_c = M if M < sub else min(tm_def, (M // sub) * sub)
        tn_c = N if N < 128 else min(tn_def, (N // 128) * 128)

        # v7x megacore: if the parallel (M,N) grid collapses to one block and N
        # allows it, split N so both TensorCores get work.
        if _cdiv(M, tm_c) == 1 and _cdiv(N, tn_c) == 1 and N >= 256:
            tn_c = max(128, ((N // 2) // 128) * 128)

        grid = (_cdiv(M, tm_c), _cdiv(N, tn_c), K_p // tk_eff)

        use_acc = jnp.dtype(out_dtype) != jnp.dtype(jnp.float32)
        kernel = _linear_kernel_lowp_out if use_acc else _linear_kernel_f32_out
        scratch = [pltpu.VMEM((tm_c, tn_c), jnp.float32)] if use_acc else []

        x_b = jnp.dtype(x2d.dtype).itemsize
        w_b = jnp.dtype(w_kn.dtype).itemsize
        b_b = jnp.dtype(b_row.dtype).itemsize
        o_b = jnp.dtype(out_dtype).itemsize

        # Explicit VMEM limit: double-buffered blocks (+ acc) with headroom,
        # clamped to a value safe on every generation (v7x: 64 MiB physical).
        per_step = (tm_c * tk_eff * x_b + tk_eff * tn_c * w_b
                    + 8 * tn_c * b_b + tm_c * tn_c * o_b)
        vmem_need = 2 * per_step + (tm_c * tn_c * 4 if use_acc else 0)
        vmem_limit = int(min(48 << 20, max(16 << 20, int(1.5 * vmem_need) + (4 << 20))))

        cost = pl.CostEstimate(
            flops=2 * M * N * K,
            transcendentals=0,
            bytes_accessed=M * K_p * x_b + K_p * N_p * w_b + N_p * b_b + M * N * o_b,
        )

        out = pl.pallas_call(
            kernel,
            out_shape=jax.ShapeDtypeStruct((M, N), out_dtype),
            grid_spec=pltpu.PrefetchScalarGridSpec(
                num_scalar_prefetch=0,
                grid=grid,
                in_specs=[
                    pl.BlockSpec((tm_c, tk_eff), lambda i, j, k: (i, k)),   # x
                    pl.BlockSpec((tk_eff, tn_c), lambda i, j, k: (k, j)),   # W^T (K,N)
                    pl.BlockSpec((1, tn_c), lambda i, j, k: (0, j)),        # bias row
                ],
                out_specs=pl.BlockSpec((tm_c, tn_c), lambda i, j, k: (i, j)),
                scratch_shapes=scratch,
            ),
            compiler_params=pltpu.CompilerParams(
                dimension_semantics=("parallel", "parallel", "arbitrary"),
                vmem_limit_bytes=vmem_limit,
            ),
            cost_estimate=cost,
        )(x2d, w_kn, b_row)

        return out.reshape(*lead_shape, N)

    return apply


def projection_forward(x, weight, bias, **tile_kwargs):
    """One-shot convenience wrapper (prefer make_projection for repeated calls:
    it transposes/pads the parameters only once)."""
    return make_projection(weight, bias, **tile_kwargs)(x)


if __name__ == "__main__":
    # Small shapes consistent with a projection over the last (feature) dim.
    batch, seq, input_dim, output_dim = 2, 8, 32, 64

    key = jax.random.PRNGKey(0)
    kx, kw, kb = jax.random.split(key, 3)

    x = jax.random.normal(kx, (batch, seq, input_dim), dtype=jnp.float32)
    # Deterministic params mimicking PyTorch's default Linear init
    # (uniform in [-1/sqrt(input_dim), 1/sqrt(input_dim)]).
    bound = 1.0 / jnp.sqrt(jnp.float32(input_dim))
    weight = jax.random.uniform(
        kw, (output_dim, input_dim), dtype=jnp.float32, minval=-bound, maxval=bound
    )
    bias = jax.random.uniform(
        kb, (output_dim,), dtype=jnp.float32, minval=-bound, maxval=bound
    )

    proj = make_projection(weight, bias)   # one-time weight transpose / pad
    y = jax.block_until_ready(proj(x))

    # Reference check against plain JAX (same semantics as nn.Linear).
    y_ref = x @ weight.T + bias
    assert y.shape == (batch, seq, output_dim)
    assert jnp.allclose(y, y_ref, atol=1e-5, rtol=1e-5)

    print("KERNEL_OK")
</pallas_src>

<mosaic_0001>
module attributes {stable_mosaic.version = 11 : i64} {
  func.func @_linear_kernel_f32_out(%arg0: i32, %arg1: i32, %arg2: i32, %arg3: memref<16x32xf32, #tpu.memory_space<vmem>>, %arg4: memref<32x64xf32, #tpu.memory_space<vmem>>, %arg5: memref<1x64xf32, #tpu.memory_space<vmem>>, %arg6: memref<16x64xf32, #tpu.memory_space<vmem>>) attributes {dimension_semantics = [#tpu.dimension_semantics<parallel>, #tpu.dimension_semantics<parallel>, #tpu.dimension_semantics<arbitrary>], iteration_bounds = array<i64: 1, 1, 1>, scalar_prefetch = 0 : i64, scratch_operands = 0 : i64, tpu.core_type = #tpu.core_type<tc>, window_params = [{transform_indices = @transform_0, window_bounds = array<i64: 16, 32>}, {transform_indices = @transform_1, window_bounds = array<i64: 32, 64>}, {transform_indices = @transform_2, window_bounds = array<i64: 1, 64>}, {transform_indices = @transform_3, window_bounds = array<i64: 16, 64>}]} {
    %c0_i32 = arith.constant 0 : i32
    %0 = arith.cmpi eq, %arg2, %c0_i32 : i32
    %1 = arith.extui %0 : i1 to i32
    %c0_i32_0 = arith.constant 0 : i32
    %2 = arith.cmpi ne, %1, %c0_i32_0 : i32
    scf.if %2 {
      %c0_8 = arith.constant 0 : index
      %c0_9 = arith.constant 0 : index
      %9 = vector.load %arg5[%c0_8, %c0_9] : memref<1x64xf32, #tpu.memory_space<vmem>>, vector<1x64xf32>
      %10 = vector.shape_cast %9 : vector<1x64xf32> to vector<1x64xf32>
      %11 = vector.broadcast %10 : vector<1x64xf32> to vector<16x64xf32>
      %c0_10 = arith.constant 0 : index
      %c0_11 = arith.constant 0 : index
      %12 = vector.load %arg6[%c0_10, %c0_11] : memref<16x64xf32, #tpu.memory_space<vmem>>, vector<16x64xf32>
      tpu.vector_store %arg6[%c0_10, %c0_11], %11 {strides = array<i32>} : memref<16x64xf32, #tpu.memory_space<vmem>>, vector<16x64xf32>,
    } else {
    }
    %c0 = arith.constant 0 : index
    %c0_1 = arith.constant 0 : index
    %3 = vector.load %arg6[%c0, %c0_1] : memref<16x64xf32, #tpu.memory_space<vmem>>, vector<16x64xf32>
    %c0_2 = arith.constant 0 : index
    %c0_3 = arith.constant 0 : index
    %4 = vector.load %arg3[%c0_2, %c0_3] : memref<16x32xf32, #tpu.memory_space<vmem>>, vector<16x32xf32>
    %c0_4 = arith.constant 0 : index
    %c0_5 = arith.constant 0 : index
    %5 = vector.load %arg4[%c0_4, %c0_5] : memref<32x64xf32, #tpu.memory_space<vmem>>, vector<32x64xf32>
    %cst = arith.constant dense<0.000000e+00> : vector<16x64xf32>
    %6 = tpu.matmul %4, %5, %cst {dimension_numbers = #tpu.dot_dimension_numbers<[1], [0], [0], [1], [0, 0, 1, 1], [], []>} : vector<16x32xf32>, vector<32x64xf32>, vector<16x64xf32> -> vector<16x64xf32>
    %7 = arith.addf %3, %6 : vector<16x64xf32>
    %c0_6 = arith.constant 0 : index
    %c0_7 = arith.constant 0 : index
    %8 = vector.load %arg6[%c0_6, %c0_7] : memref<16x64xf32, #tpu.memory_space<vmem>>, vector<16x64xf32>
    tpu.vector_store %arg6[%c0_6, %c0_7], %7 {strides = array<i32>} : memref<16x64xf32, #tpu.memory_space<vmem>>, vector<16x64xf32>,
    return
  }
  func.func @transform_0(%arg0: i32, %arg1: i32, %arg2: i32) -> (i32, i32) {
    %c0_i32 = arith.constant 0 : i32
    return %arg0, %arg2 : i32, i32
  }
  func.func @transform_1(%arg0: i32, %arg1: i32, %arg2: i32) -> (i32, i32) {
    %c0_i32 = arith.constant 0 : i32
    return %arg2, %arg1 : i32, i32
  }
  func.func @transform_2(%arg0: i32, %arg1: i32, %arg2: i32) -> (i32, i32) {
    %c0_i32 = arith.constant 0 : i32
    %c0_i32_0 = arith.constant 0 : i32
    return %c0_i32, %arg1 : i32, i32
  }
  func.func @transform_3(%arg0: i32, %arg1: i32, %arg2: i32) -> (i32, i32) {
    %c0_i32 = arith.constant 0 : i32
    return %arg0, %arg1 : i32, i32
  }
}

</mosaic_0001>

<bundles_post_ra>
// kernel: tpu_custom_call.1
= control target key start
LH: loop header
LB: loop body
LE: loop exit
PB: predicated region body
PF: predicated region fallthrough
CT: control target
= control target key end

     0   :  { %8 = vsyncpa [#allocation3], 0  ;;  %s354_s0 = inlined_call_operand.hbm [shape: f32[16,32], index: 0, kind: input, shape index: {}]   ;;  %s355_s1 = inlined_call_operand.hbm [shape: f32[32,64], index: 1, kind: input, shape index: {}]   ;;  %s356_s2 = inlined_call_operand.vmem [shape: f32[1,64], index: 2, kind: input, shape index: {}]   ;;  %s357_s3 = inlined_call_operand.hbm [shape: f32[16,64], index: 3, kind: output, shape index: {}]  }
   0x1   :  { %9 = vsyncpa [#allocation6], 0 }
   0x2   :  { %10 = vsyncpa [#allocation4], 0  ;;  %s275_s12 = smov [#allocation2]   ;;  %s203_s16 = scalar_lea.hbm %s354_s0, 256 }
   0x3   :  { %s16_s13 = sshll.u32 %s275_s12, 4  ;;  %p204_p0 = scmp.ne.s32.totalorder %s354_s0, %s203_s16  ;;  %s17_s13 = int_to_ptr.vmem [resolvable:$true] %s16_s13 }
   0x4   :  { %p207_p1 = scmp.lt.u32.totalorder %s203_s16, %s354_s0 }
   0x6   :  { %p209_p2 = pnand %p207_p1, %p204_p0 }
   0x8   :  { %212 = shalt.err (!%p209_p2)
}
   0x9   :  { %s213_s21 = scalar_lea.vmem %s17_s13, 256  ;;  %p218_p4 = scmp.lt.s32.totalorder %s17_s13, %s17_s13 }
   0xa   :  { %p214_p3 = scmp.ne.s32.totalorder %s17_s13, %s213_s21  ;;  %p219_p5 = scmp.lt.s32.totalorder %s213_s21, %s213_s21 }
   0xc   :  { %p220_p6 = por %p219_p5, %p218_p4 }
   0xe   :  { %p221_p7 = pnand %p220_p6, %p214_p3 }
  0x10   :  { %224 = shalt.err (!%p221_p7)
}
  0x11   :  { %s276_s22 = smov 128   ;;  %s277_s23 = smov 8  }
  0x12   :  { %22 = dma.hbm_to_vmem [thread:$0]  %s354_s0, 256, %s17_s13, [#allocation3], %s276_s22, %s276_s22, %s277_s23  }
  0x13   :  { %s278_s26 = smov [#allocation5]   ;;  %s225_s30 = scalar_lea.hbm %s355_s1, 512 }
  0x14   :  { %s28_s27 = sshll.u32 %s278_s26, 4  ;;  %p226_p8 = scmp.ne.s32.totalorder %s355_s1, %s225_s30  ;;  %s29_s27 = int_to_ptr.vmem [resolvable:$true] %s28_s27 }
  0x15   :  { %p229_p9 = scmp.lt.u32.totalorder %s225_s30, %s355_s1 }
  0x17   :  { %p231_p10 = pnand %p229_p9, %p226_p8 }
  0x19   :  { %234 = shalt.err (!%p231_p10)
}
  0x1a   :  { %s235_s8 = scalar_lea.vmem %s29_s27, 512  ;;  %p240_p12 = scmp.lt.s32.totalorder %s29_s27, %s29_s27 }
  0x1b   :  { %p236_p11 = scmp.ne.s32.totalorder %s29_s27, %s235_s8  ;;  %p241_p13 = scmp.lt.s32.totalorder %s235_s8, %s235_s8 }
  0x1d   :  { %p242_p0 = por %p241_p13, %p240_p12 }
  0x1f   :  { %p243_p1 = pnand %p242_p0, %p236_p11 }
  0x21   :  { %246 = shalt.err (!%p243_p1)
}
  0x22   :  { %34 = dma.hbm_to_vmem [thread:$0]  %s355_s1, 512, %s29_s27, [#allocation6], %s276_s22, %s276_s22, %s277_s23  }
  0x23   :  { %269 = dma.done.wait [#allocation3], 256  }
  0x24   :  { %270 = vsyncadd [#allocation3], 4294967040 }
  0x25   :  { %271 = dma.done.wait [#allocation6], 512  }
  0x26   :  { %272 = vsyncadd [#allocation6], 4294966784  ;;  %vm65_vm0 = vcmask 261120   ;;  %v61_v0 = vld [vmem:[#allocation5] sm:$0xff]  ;;  %v62_v1 = vld [vmem:[#allocation5 + $0x8] sm:$0xff]  ;;  %vm54_vm1 = vcmask 523264  }
  0x27   :  { %v63_v2 = vld [vmem:[#allocation5 + $0x10] sm:$0xff]  ;;  %v190_v3 = vpack.c.bf16 %v62_v1, %v61_v0  ;;  %v64_v4 = vld [vmem:[#allocation5 + $0x18] sm:$0xff]  ;;  %s279_s1 = smov [#allocation7]  }
  0x28   :  { %v59_v5 = vld [vmem:[#allocation2] sm:$0xff]  ;;  %v194_v6 = vpack.c.bf16 %v64_v4, %v63_v2  ;;  %v60_v8 = vld [vmem:[#allocation2 + $0x8] sm:$0xff]  ;;  %s157_s12 = sshll.u32 %s279_s1, 4  ;;  %s158_s12 = int_to_ptr.vmem [resolvable:$true] %s157_s12 }
  0x29   :  { %187 = vmatprep.mubr.msk.f32.mxu0 %vm65_vm0, %v59_v5  ;;  %v170_v7 = vld [vmem:[%s356_s2] ss:$0 sm:$0xff]  ;;  %191 = vmatprep.subr.bf16.mxu0 %v190_v3  ;;  %s247_s2 = scalar_lea.vmem %s158_s12, 256  ;;  %p252_p3 = scmp.lt.s32.totalorder %s158_s12, %s158_s12 }
  0x2a   :  { %56 = vst.msk [vmem:[#allocation7 + $0x8] sm:$0xff] %vm54_vm1, %v170_v7  ;;  %55 = vst.msk [vmem:[#allocation7] sm:$0xff] %vm54_vm1, %v170_v7  ;;  %193 = vmatpush3.bf16.msra.mxu0 %v190_v3  ;;  %p248_p2 = scmp.ne.s32.totalorder %s158_s12, %s247_s2  ;;  %p253_p4 = scmp.lt.s32.totalorder %s247_s2, %s247_s2 }
  0x2b   :  { %195 = vmatprep.subr.bf16.mxu0 %v194_v6 }
  0x2c   :  { %p254_p5 = por %p253_p4, %p252_p3 }
  0x2e   :  { %197 = vmatpush3.bf16.msra.mxu0 %v194_v6  ;;  %p255_p6 = pnand %p254_p5, %p248_p2 }
  0x31   :  { %188 = vmatmul.mubr.msk.f32.vlgmr.msra.gmra.mrb[0].mxu0 %vm65_vm0, %v60_v8  ;;  %v58_v9 = vld [vmem:[#allocation7 + $0x8] sm:$0xff]  ;;  %v57_v10 = vld [vmem:[#allocation7] sm:$0xff] }
 0x104   :  { %v189_v11 = vpop.f32.mrb[0].mxu0 }
 0x105   :  { %v148_v12 = vadd.f32 %v189_v11, %v58_v9  ;;  %v138_v13 = vpop.f32.mrb[1].mxu0 }
 0x106   :  { %v147_v14 = vadd.f32 %v138_v13, %v57_v10 }
 0x107   :  { %151 = vst.msk [vmem:[#allocation7 + $0x8] sm:$0xff] %vm54_vm1, %v148_v12 }
 0x108   :  { %150 = vst.msk [vmem:[#allocation7] sm:$0xff] %vm54_vm1, %v147_v14 }
 0x109   :  { %258 = shalt.err (!%p255_p6)
}
 0x10a   :  { %s259_s15 = scalar_lea.hbm %s357_s3, 256 }
 0x10b   :  { %p260_p7 = scmp.ne.s32.totalorder %s357_s3, %s259_s15  ;;  %p263_p8 = scmp.lt.u32.totalorder %s259_s15, %s357_s3 }
 0x10d   :  { %p265_p9 = pnand %p263_p8, %p260_p7 }
 0x10f   :  { %268 = shalt.err (!%p265_p9)
}
 0x110   :  { %163 = dma.vmem_to_hbm [thread:$0]  %s158_s12, 256, %s357_s3, [#allocation4], %s276_s22, %s276_s22, %s277_s23  }
 0x111   :  { %273 = dma.done.wait [#allocation4], 256  }
 0x112   :  { %274 = vsyncadd [#allocation4], 4294967040 }
 0x113   :  { %167 = vsyncpa [#allocation3], 1 }
 0x114   :  { %168 = vsyncpa [#allocation6], 1 }
 0x115   :  { %169 = vsyncpa [#allocation4], 1 }

</bundles_post_ra>
